<compile_context>
chip_gen: v6e
topology: v6e:2x2x1
jax: 0.10.0
libtpu: 0.0.40
codegen_flags: <defaults>
</compile_context>

<pallas_src>
import functools

import jax
import jax.numpy as jnp
from jax import lax
from jax.experimental import pallas as pl
from jax.experimental.pallas import tpu as pltpu

NEG = -1.0e12  # same constant as the PyTorch module


def _milnce_kernel(rows_ref, colsT_ref, lse_t_ref, lse_v_ref, lse_k_ref, *,
                   n_pair):
    """Per selected batch index b (tile row/column r):

      lse_t[b] = logsumexp(from_text row:  sim[mark_ind[b], :], positive block -> -1e12)
      lse_v[b] = logsumexp(from_video row: sim[:, mark_ind[b]])
      lse_k[b] = logsumexp(kept mm_mask==1 chunk of that column), own max

    rows_ref  : (tb, N) sim[mark_ind, :]   (from_text source)
    colsT_ref : (N, tb) sim[:, mark_ind]   (from_video source, untransposed)
    lse_t_ref : (tb, 1), lse_v_ref / lse_k_ref : (1, tb)  (lane-dense)
    """
    tb, n = rows_ref.shape
    # First batch index of this tile, pre-scaled by n_pair (scalar, once).
    base_scaled = pl.program_id(0) * (tb * n_pair)

    rows = rows_ref[...].astype(jnp.float32)      # (tb, N) upcast in-kernel
    cols = colsT_ref[...].astype(jnp.float32)     # (N, tb)

    # ---- from_text half: mask columns [b*n_pair, (b+1)*n_pair) to -1e12 ----
    j_ids = lax.broadcasted_iota(jnp.int32, (tb, n), 1)
    lo_t = lax.broadcasted_iota(jnp.int32, (tb, n), 0) * n_pair + base_scaled
    off_t = j_ids - lo_t
    text = jnp.where((off_t >= 0) & (off_t < n_pair), NEG, rows)
    m_t = jnp.max(text, axis=1, keepdims=True)                    # (tb, 1)
    s_t = jnp.sum(jnp.exp(text - m_t), axis=1, keepdims=True)
    lse_t_ref[...] = m_t + jnp.log(s_t)

    # ---- from_video half: full-column logsumexp (sublane reduction) ----
    m_v = jnp.max(cols, axis=0, keepdims=True)                    # (1, tb)
    s_v = jnp.sum(jnp.exp(cols - m_v), axis=0, keepdims=True)
    lse_v_ref[...] = m_v + jnp.log(s_v)

    # ---- kept (mm_mask==1) block-diagonal chunk of the column, own max ----
    i_ids = lax.broadcasted_iota(jnp.int32, (n, tb), 0)
    lo_v = lax.broadcasted_iota(jnp.int32, (n, tb), 1) * n_pair + base_scaled
    off_v = i_ids - lo_v
    kept = jnp.where((off_v >= 0) & (off_v < n_pair), cols, -jnp.inf)
    m_k = jnp.max(kept, axis=0, keepdims=True)                    # (1, tb)
    s_k = jnp.sum(jnp.exp(kept - m_k), axis=0, keepdims=True)     # exp(-inf)=0
    lse_k_ref[...] = m_k + jnp.log(s_k)


def _vmem_capacity_bytes():
    try:
        cap = getattr(pltpu.get_tpu_info(), "vmem_capacity_bytes", None)
        if cap:
            return int(cap)
    except Exception:
        pass
    return 64 * 1024 * 1024  # conservative fallback: v7x per-TensorCore VMEM


def _pick_row_tile(batch_size, n, itemsize, budget):
    """Row tile tb over the B selected batch indices.

    tb is the lane dim of the (N, tb) column block and the (1, tb) outputs, so
    it must be a multiple of 128 or equal the full extent B.  Prefer the
    largest multiple-of-128 divisor of B whose double-buffered input footprint
    (2 inputs x 2 buffers x tb x N x itemsize) fits the budget -- this also
    gives >= 2 grid tiles for large batches so both v7x TensorCores stream.
    """
    per_row = 4 * n * itemsize
    cands = [tb for tb in range(128, batch_size, 128) if batch_size % tb == 0]
    fitting = [tb for tb in cands if tb * per_row <= budget]
    if fitting:
        return max(fitting)
    if cands:                 # nothing fits: take the smallest legal tile
        return min(cands)
    return batch_size         # full-extent block (always legal)


def milnce_loss_pallas(sim_matrix, batch_size, n_pair):
    B = batch_size
    N = B * n_pair
    assert sim_matrix.shape == (N, N)
    half = n_pair // 2

    # Strided slices (no gather, no transpose, no full-matrix cast): only the
    # B rows / B columns the loss reads ever leave HBM, in their input dtype.
    rows = lax.slice(sim_matrix, (half, 0), (N, N), strides=(n_pair, 1))   # (B, N)
    colsT = lax.slice(sim_matrix, (0, half), (N, N), strides=(1, n_pair))  # (N, B)

    itemsize = jnp.dtype(sim_matrix.dtype).itemsize
    vmem_cap = _vmem_capacity_bytes()
    budget = (3 * vmem_cap) // 8                 # double-buffered input budget
    tb = _pick_row_tile(B, N, itemsize, budget)
    grid = (B // tb,)

    need = 4 * tb * N * itemsize + (8 << 20)
    vmem_limit = int(min(max(need, 32 << 20), (3 * vmem_cap) // 4))

    lse_t, lse_v, lse_k = pl.pallas_call(
        functools.partial(_milnce_kernel, n_pair=n_pair),
        out_shape=(
            jax.ShapeDtypeStruct((B, 1), jnp.float32),   # text-half lse
            jax.ShapeDtypeStruct((1, B), jnp.float32),   # video-half lse
            jax.ShapeDtypeStruct((1, B), jnp.float32),   # kept-entries lse
        ),
        grid=grid,
        in_specs=[
            pl.BlockSpec((tb, N), lambda i: (i, 0)),
            pl.BlockSpec((N, tb), lambda i: (0, i)),
        ],
        out_specs=(
            pl.BlockSpec((tb, 1), lambda i: (i, 0)),
            pl.BlockSpec((1, tb), lambda i: (0, i)),
            pl.BlockSpec((1, tb), lambda i: (0, i)),
        ),
        compiler_params=pltpu.CompilerParams(
            dimension_semantics=("parallel",),     # shard row tiles across TCs
            vmem_limit_bytes=vmem_limit,
        ),
        cost_estimate=pl.CostEstimate(
            flops=int(26 * B * N),
            transcendentals=int(3 * B * N),
            bytes_accessed=int(2 * B * N * itemsize + 12 * B),
        ),
    )(rows, colsT)

    # Tiny O(B) epilogue: lse over the virtual (2N)-long row minus lse over the
    # kept entries, then masked_select(choice).mean() (denominator is B).
    new_logpt = jnp.logaddexp(lse_v[0], lse_t[:, 0]) - lse_k[0]
    return jnp.sum(new_logpt) / B


milnce_loss = jax.jit(milnce_loss_pallas, static_argnums=(1, 2))


def milnce_loss_ref(sim_matrix, batch_size, n_pair):
    """Pure-JAX reference mirroring the PyTorch forward exactly."""
    sim = sim_matrix.astype(jnp.float32)
    mm_mask = jnp.kron(
        jnp.eye(batch_size, dtype=jnp.float32),
        jnp.ones((n_pair, n_pair), dtype=jnp.float32),
    )
    from_text = sim + mm_mask * NEG
    from_video = sim.T
    new_sim = jnp.concatenate([from_video, from_text], axis=-1)
    logpt = jax.nn.log_softmax(new_sim, axis=-1)
    mm_mask_logpt = jnp.concatenate([mm_mask, jnp.zeros_like(mm_mask)], axis=-1)
    masked_logpt = logpt + (1.0 - mm_mask_logpt) * NEG
    new_logpt = -jax.scipy.special.logsumexp(masked_logpt, axis=-1)
    mark_ind = jnp.arange(batch_size) * n_pair + n_pair // 2
    return jnp.mean(new_logpt[mark_ind])


if __name__ == "__main__":
    key = jax.random.PRNGKey(0)
    # (B=256, n_pair=2) exercises the multi-tile (grid=(2,)) path with tb=128.
    for batch_size, n_pair in ((2, 4), (8, 4), (256, 2)):
        N = batch_size * n_pair
        key, sub = jax.random.split(key)
        sim_matrix = jax.random.normal(sub, (N, N), dtype=jnp.float32)

        loss = jax.block_until_ready(milnce_loss(sim_matrix, batch_size, n_pair))
        ref = jax.block_until_ready(milnce_loss_ref(sim_matrix, batch_size, n_pair))
        assert jnp.allclose(loss, ref, atol=1e-4, rtol=1e-4), (
            batch_size, n_pair, loss, ref)

    print("KERNEL_OK")
</pallas_src>

<mosaic_0001>
module attributes {stable_mosaic.version = 11 : i64} {
  func.func @_milnce_kernel(%arg0: i32, %arg1: memref<2x8xf32, #tpu.memory_space<vmem>>, %arg2: memref<8x2xf32, #tpu.memory_space<vmem>>, %arg3: memref<2x1xf32, #tpu.memory_space<vmem>>, %arg4: memref<1x2xf32, #tpu.memory_space<vmem>>, %arg5: memref<1x2xf32, #tpu.memory_space<vmem>>) attributes {dimension_semantics = [#tpu.dimension_semantics<parallel>], iteration_bounds = array<i64: 1>, scalar_prefetch = 0 : i64, scratch_operands = 0 : i64, tpu.core_type = #tpu.core_type<tc>, window_params = [{transform_indices = @transform_0, window_bounds = array<i64: 2, 8>}, {transform_indices = @transform_1, window_bounds = array<i64: 8, 2>}, {transform_indices = @transform_2, window_bounds = array<i64: 2, 1>}, {transform_indices = @transform_3, window_bounds = array<i64: 1, 2>}, {transform_indices = @transform_4, window_bounds = array<i64: 1, 2>}]} {
    %c8_i32 = arith.constant 8 : i32
    %0 = arith.muli %arg0, %c8_i32 : i32
    %c0 = arith.constant 0 : index
    %c0_0 = arith.constant 0 : index
    %1 = vector.load %arg1[%c0, %c0_0] : memref<2x8xf32, #tpu.memory_space<vmem>>, vector<2x8xf32>
    %c0_1 = arith.constant 0 : index
    %c0_2 = arith.constant 0 : index
    %2 = vector.load %arg2[%c0_1, %c0_2] : memref<8x2xf32, #tpu.memory_space<vmem>>, vector<8x2xf32>
    %3 = tpu.iota {dimensions = array<i32: 1>} : vector<2x8xi32>
    %4 = tpu.iota {dimensions = array<i32: 0>} : vector<2x8xi32>
    %c4_i32 = arith.constant 4 : i32
    %5 = vector.broadcast %c4_i32 : i32 to vector<2x8xi32>
    %6 = arith.muli %4, %5 : vector<2x8xi32>
    %7 = vector.broadcast %0 : i32 to vector<2x8xi32>
    %8 = arith.addi %6, %7 : vector<2x8xi32>
    %9 = arith.subi %3, %8 : vector<2x8xi32>
    %c0_i32 = arith.constant 0 : i32
    %10 = vector.broadcast %c0_i32 : i32 to vector<2x8xi32>
    %11 = arith.cmpi sge, %9, %10 : vector<2x8xi32>
    %c4_i32_3 = arith.constant 4 : i32
    %12 = vector.broadcast %c4_i32_3 : i32 to vector<2x8xi32>
    %13 = arith.cmpi slt, %9, %12 : vector<2x8xi32>
    %14 = arith.andi %11, %13 : vector<2x8xi1>
    %cst = arith.constant -9.99999995E+11 : f32
    %15 = vector.broadcast %cst : f32 to vector<2x8xf32>
    %16 = arith.select %14, %15, %1 : vector<2x8xi1>, vector<2x8xf32>
    %cst_4 = arith.constant dense<0xFF800000> : vector<2xf32>
    %17 = vector.multi_reduction <maximumf>, %16, %cst_4 [1] : vector<2x8xf32> to vector<2xf32>
    %18 = vector.shape_cast %17 : vector<2xf32> to vector<2x1xf32>
    %19 = vector.broadcast %18 : vector<2x1xf32> to vector<2x8xf32>
    %20 = arith.subf %16, %19 : vector<2x8xf32>
    %21 = math.exp %20 : vector<2x8xf32>
    %cst_5 = arith.constant dense<0.000000e+00> : vector<2xf32>
    %22 = vector.multi_reduction <add>, %21, %cst_5 [1] : vector<2x8xf32> to vector<2xf32>
    %23 = vector.shape_cast %22 : vector<2xf32> to vector<2x1xf32>
    %24 = math.log %23 : vector<2x1xf32>
    %25 = arith.addf %18, %24 : vector<2x1xf32>
    %c0_6 = arith.constant 0 : index
    %c0_7 = arith.constant 0 : index
    %26 = vector.load %arg3[%c0_6, %c0_7] : memref<2x1xf32, #tpu.memory_space<vmem>>, vector<2x1xf32>
    tpu.vector_store %arg3[%c0_6, %c0_7], %25 {strides = array<i32>} : memref<2x1xf32, #tpu.memory_space<vmem>>, vector<2x1xf32>,
    %cst_8 = arith.constant dense<0xFF800000> : vector<2xf32>
    %27 = vector.multi_reduction <maximumf>, %2, %cst_8 [0] : vector<8x2xf32> to vector<2xf32>
    %28 = vector.shape_cast %27 : vector<2xf32> to vector<1x2xf32>
    %29 = vector.broadcast %28 : vector<1x2xf32> to vector<8x2xf32>
    %30 = arith.subf %2, %29 : vector<8x2xf32>
    %31 = math.exp %30 : vector<8x2xf32>
    %cst_9 = arith.constant dense<0.000000e+00> : vector<2xf32>
    %32 = vector.multi_reduction <add>, %31, %cst_9 [0] : vector<8x2xf32> to vector<2xf32>
    %33 = vector.shape_cast %32 : vector<2xf32> to vector<1x2xf32>
    %34 = math.log %33 : vector<1x2xf32>
    %35 = arith.addf %28, %34 : vector<1x2xf32>
    %c0_10 = arith.constant 0 : index
    %c0_11 = arith.constant 0 : index
    %36 = vector.load %arg4[%c0_10, %c0_11] : memref<1x2xf32, #tpu.memory_space<vmem>>, vector<1x2xf32>
    tpu.vector_store %arg4[%c0_10, %c0_11], %35 {strides = array<i32>} : memref<1x2xf32, #tpu.memory_space<vmem>>, vector<1x2xf32>,
    %37 = tpu.iota {dimensions = array<i32: 0>} : vector<8x2xi32>
    %38 = tpu.iota {dimensions = array<i32: 1>} : vector<8x2xi32>
    %c4_i32_12 = arith.constant 4 : i32
    %39 = vector.broadcast %c4_i32_12 : i32 to vector<8x2xi32>
    %40 = arith.muli %38, %39 : vector<8x2xi32>
    %41 = vector.broadcast %0 : i32 to vector<8x2xi32>
    %42 = arith.addi %40, %41 : vector<8x2xi32>
    %43 = arith.subi %37, %42 : vector<8x2xi32>
    %c0_i32_13 = arith.constant 0 : i32
    %44 = vector.broadcast %c0_i32_13 : i32 to vector<8x2xi32>
    %45 = arith.cmpi sge, %43, %44 : vector<8x2xi32>
    %c4_i32_14 = arith.constant 4 : i32
    %46 = vector.broadcast %c4_i32_14 : i32 to vector<8x2xi32>
    %47 = arith.cmpi slt, %43, %46 : vector<8x2xi32>
    %48 = arith.andi %45, %47 : vector<8x2xi1>
    %cst_15 = arith.constant 0xFF800000 : f32
    %49 = vector.broadcast %cst_15 : f32 to vector<8x2xf32>
    %50 = arith.select %48, %2, %49 : vector<8x2xi1>, vector<8x2xf32>
    %cst_16 = arith.constant dense<0xFF800000> : vector<2xf32>
    %51 = vector.multi_reduction <maximumf>, %50, %cst_16 [0] : vector<8x2xf32> to vector<2xf32>
    %52 = vector.shape_cast %51 : vector<2xf32> to vector<1x2xf32>
    %53 = vector.broadcast %52 : vector<1x2xf32> to vector<8x2xf32>
    %54 = arith.subf %50, %53 : vector<8x2xf32>
    %55 = math.exp %54 : vector<8x2xf32>
    %cst_17 = arith.constant dense<0.000000e+00> : vector<2xf32>
    %56 = vector.multi_reduction <add>, %55, %cst_17 [0] : vector<8x2xf32> to vector<2xf32>
    %57 = vector.shape_cast %56 : vector<2xf32> to vector<1x2xf32>
    %58 = math.log %57 : vector<1x2xf32>
    %59 = arith.addf %52, %58 : vector<1x2xf32>
    %c0_18 = arith.constant 0 : index
    %c0_19 = arith.constant 0 : index
    %60 = vector.load %arg5[%c0_18, %c0_19] : memref<1x2xf32, #tpu.memory_space<vmem>>, vector<1x2xf32>
    tpu.vector_store %arg5[%c0_18, %c0_19], %59 {strides = array<i32>} : memref<1x2xf32, #tpu.memory_space<vmem>>, vector<1x2xf32>,
    return
  }
  func.func @transform_0(%arg0: i32) -> (i32, i32) {
    %c0_i32 = arith.constant 0 : i32
    %c0_i32_0 = arith.constant 0 : i32
    return %arg0, %c0_i32 : i32, i32
  }
  func.func @transform_1(%arg0: i32) -> (i32, i32) {
    %c0_i32 = arith.constant 0 : i32
    %c0_i32_0 = arith.constant 0 : i32
    return %c0_i32, %arg0 : i32, i32
  }
  func.func @transform_2(%arg0: i32) -> (i32, i32) {
    %c0_i32 = arith.constant 0 : i32
    %c0_i32_0 = arith.constant 0 : i32
    return %arg0, %c0_i32 : i32, i32
  }
  func.func @transform_3(%arg0: i32) -> (i32, i32) {
    %c0_i32 = arith.constant 0 : i32
    %c0_i32_0 = arith.constant 0 : i32
    return %c0_i32, %arg0 : i32, i32
  }
  func.func @transform_4(%arg0: i32) -> (i32, i32) {
    %c0_i32 = arith.constant 0 : i32
    %c0_i32_0 = arith.constant 0 : i32
    return %c0_i32, %arg0 : i32, i32
  }
}

</mosaic_0001>

<bundles_post_ra>
// kernel: milnce_loss_pallas.1
= control target key start
LH: loop header
LB: loop body
LE: loop exit
PB: predicated region body
PF: predicated region fallthrough
CT: control target
= control target key end

     0   :  { %v17_v0 = vlaneseq  ;;  %vm44_vm0 = vcmask 15360   ;;  %vm29_vm1 = vcmask 58368   ;;  %vm65_vm8 = vcmask 8192   ;;  %s165_s1 = inlined_call_operand.vmem [shape: f32[8,2], index: 1, kind: input, shape index: {}]   ;;  %s166_s0 = inlined_call_operand.vmem [shape: f32[2,8], index: 0, kind: input, shape index: {}]   ;;  %s167_s3 = inlined_call_operand.vmem [shape: f32[1,2], index: 3, kind: output, shape index: {1}]   ;;  %s168_s4 = inlined_call_operand.vmem [shape: f32[1,2], index: 4, kind: output, shape index: {2}]   ;;  %s169_s2 = inlined_call_operand.vmem [shape: f32[2,1], index: 2, kind: output, shape index: {0}]  }
   0x1   :  { %v16_v1 = vld [vmem:[%s165_s1] sm:$0xff]  ;;  %vm42_vm9 = vcmask 1024  }
   0x2   :  { %v18_v2 = vand.u32 127, %v17_v0  ;;  %v20_v3 = vshrl.u32 %v17_v0, 7  ;;  %v45_v4 = vsel %vm44_vm0, %v16_v1, -inf  ;;  %v15_v11 = vld [vmem:[%s166_s0] sm:$0x3] }
   0x3   :  { %v46_v5 = vrot.slane %v45_v4, 4 }
   0x4   :  { %v21_v6 = vmul.u32 4, %v20_v3  ;;  %v67_v7 = vmul.u32 4, %v18_v2 }
   0x5   :  { %v47_v8 = vmax.f32 %v45_v4, %v46_v5 }
   0x6   :  { %v24_v9 = vsub.s32 %v18_v2, %v21_v6  ;;  %v69_v10 = vsub.s32 %v20_v3, %v67_v7 }
   0x7   :  { %v48_v12 = vrot.slane %v47_v8, 2 }
   0x8   :  { %vm25_vm2 = vcmp.ge.s32.totalorder %v24_v9, 0  ;;  %vm26_vm3 = vcmp.lt.s32.totalorder %v24_v9, 4  ;;  %vm70_vm4 = vcmp.ge.s32.totalorder %v69_v10, 0  ;;  %vm71_vm5 = vcmp.lt.s32.totalorder %v69_v10, 4 }
   0x9   :  { %vm27_vm6 = vmand %vm25_vm2, %vm26_vm3  ;;  %v49_v13 = vmax.f32 %v47_v8, %v48_v12 }
   0xa   :  { %v28_v14 = vsel %vm27_vm6, -1e+12, %v15_v11  ;;  %vm72_vm7 = vmand %vm70_vm4, %vm71_vm5 }
   0xb   :  { %v30_v15 = vsel %vm29_vm1, %v28_v14, -inf  ;;  %v50_v16 = vrot.slane %v49_v13, 1  ;;  %v73_v17 = vsel %vm72_vm7, %v16_v1, -inf }
   0xc   :  { %v74_v18 = vsel %vm44_vm0, %v73_v17, -inf  ;;  %31 = vmax.xlane.f32.xlu0 %v30_v15 }
   0xd   :  { %v51_v19 = vmax.f32 %v49_v13, %v50_v16  ;;  %v75_v20 = vrot.slane %v74_v18, 4 }
   0xf   :  { %v52_v21 = vsub.f32 %v16_v1, %v51_v19  ;;  %v76_v22 = vmax.f32 %v74_v18, %v75_v20 }
  0x11   :  { %v53_v23 = vmul.f32 1.442695, %v52_v21  ;;  %v77_v24 = vrot.slane %v76_v22, 2 }
  0x13   :  { %107 = vpow2.f32 %v53_v23  ;;  %v78_v25 = vmax.f32 %v76_v22, %v77_v24 }
  0x15   :  { %v79_v26 = vrot.slane %v78_v25, 1 }
  0x17   :  { %v80_v27 = vmax.f32 %v78_v25, %v79_v26 }
  0x19   :  { %v81_v28 = vsub.f32 %v73_v17, %v80_v27 }
  0x1b   :  { %v82_v29 = vmul.f32 1.442695, %v81_v28 }
  0x1d   :  { %109 = vpow2.f32 %v82_v29 }
  0x20   :  { %v108_v30 = vpop.eup %107 }
  0x21   :  { %v55_v31 = vsel %vm44_vm0, %v108_v30, 0.0 }
  0x22   :  { %v56_v32 = vrot.slane %v55_v31, 4 }
  0x24   :  { %v57_v33 = vadd.f32 %v56_v32, %v55_v31 }
  0x26   :  { %v58_v34 = vrot.slane %v57_v33, 2 }
  0x28   :  { %v59_v35 = vadd.f32 %v58_v34, %v57_v33 }
  0x2a   :  { %v110_v36 = vpop.eup %109  ;;  %v60_v37 = vrot.slane %v59_v35, 1 }
  0x2b   :  { %v84_v38 = vsel %vm44_vm0, %v110_v36, 0.0 }
  0x2c   :  { %v61_v39 = vadd.f32 %v60_v37, %v59_v35  ;;  %v85_v40 = vrot.slane %v84_v38, 4 }
  0x2e   :  { %111 = vlog2.f32 %v61_v39  ;;  %v86_v41 = vadd.f32 %v85_v40, %v84_v38 }
  0x30   :  { %v87_v42 = vrot.slane %v86_v41, 2 }
  0x32   :  { %v88_v43 = vadd.f32 %v87_v42, %v86_v41 }
  0x34   :  { %v89_v44 = vrot.slane %v88_v43, 1 }
  0x36   :  { %v90_v45 = vadd.f32 %v89_v44, %v88_v43 }
  0x38   :  { %113 = vlog2.f32 %v90_v45 }
  0x3b   :  { %v112_v46 = vpop.eup %111 }
  0x3c   :  { %v63_v47 = vmul.f32 0.6931472, %v112_v46 }
  0x3e   :  { %v64_v48 = vadd.f32 %v63_v47, %v51_v19 }
  0x40   :  { %66 = vst.msk [vmem:[%s167_s3] sm:$0x1] %vm65_vm8, %v64_v48 }
  0x45   :  { %v114_v49 = vpop.eup %113 }
  0x46   :  { %v92_v50 = vmul.f32 0.6931472, %v114_v49 }
  0x48   :  { %v93_v51 = vadd.f32 %v92_v50, %v80_v27 }
  0x4a   :  { %94 = vst.msk [vmem:[%s168_s4] sm:$0x1] %vm65_vm8, %v93_v51 }
  0x95   :  { %v32_v52 = vpop.xlane.xlu0 %31 }
  0x96   :  { %v33_v53 = vsub.f32 %v28_v14, %v32_v52 }
  0x98   :  { %v34_v54 = vmul.f32 1.442695, %v33_v53 }
  0x9a   :  { %115 = vpow2.f32 %v34_v54 }
  0xa7   :  { %v116_v55 = vpop.eup %115 }
  0xa8   :  { %v36_v56 = vsel %vm29_vm1, %v116_v55, 0.0 }
  0xa9   :  { %37 = vadd.xlane.f32.xlu0 %v36_v56 }
 0x132   :  { %v38_v57 = vpop.xlane.xlu0 %37 }
 0x133   :  { %117 = vlog2.f32 %v38_v57 }
 0x140   :  { %v118_v58 = vpop.eup %117 }
 0x141   :  { %v40_v59 = vmul.f32 0.6931472, %v118_v58 }
 0x143   :  { %v41_v60 = vadd.f32 %v40_v59, %v32_v52 }
 0x145   :  { %43 = vst.msk [vmem:[%s169_s2] sm:$0x3] %vm42_vm9, %v41_v60 }

</bundles_post_ra>
